<compile_context>
chip_gen: v5e
topology: v5e:2x2
jax: 0.10.0
libtpu: 0.0.40
codegen_flags: <defaults>
</compile_context>

<pallas_src>
import math
import functools

import jax
import jax.numpy as jnp
from jax.experimental import pallas as pl
from jax.experimental.pallas import tpu as pltpu


def _mha_kernel(q_ref, k_ref, v_ref,
                wq_ref, bq_ref, wk_ref, bk_ref, wv_ref, bv_ref,
                wo_ref, bo_ref,
                o_ref,
                *, heads: int, d_k: int):
    Bblk, S, D = q_ref.shape
    M = Bblk * S                      # flatten batch into the matmul M dimension

    # (Bblk*S, D) slabs; bf16 operands for the MXU (weights arrive bf16 already).
    qf = q_ref[...].reshape(M, D).astype(jnp.bfloat16)
    kf = k_ref[...].reshape(M, D).astype(jnp.bfloat16)
    vf = v_ref[...].reshape(M, D).astype(jnp.bfloat16)

    # Input projections: one wide K=D matmul each over the whole block, f32 acc.
    # (q, k, v are distinct activations, so the QKV weights cannot be fused
    #  into a single (D, 3D) matmul without changing semantics.)
    qp = jnp.dot(qf, wq_ref[...], preferred_element_type=jnp.float32) + bq_ref[...]
    kp = jnp.dot(kf, wk_ref[...], preferred_element_type=jnp.float32) + bk_ref[...]
    vp = jnp.dot(vf, wv_ref[...], preferred_element_type=jnp.float32) + bv_ref[...]

    # bf16 copies (cast once, outside the head loop) for the attention matmuls;
    # softmax math itself stays f32.
    qp_b = qp.astype(jnp.bfloat16).reshape(Bblk, S, D)
    kp_b = kp.astype(jnp.bfloat16).reshape(Bblk, S, D)
    vp_b = vp.astype(jnp.bfloat16).reshape(Bblk, S, D)

    scale = 1.0 / math.sqrt(d_k)

    head_outs = []
    for h in range(heads):                      # static unroll (heads is tiny)
        lo = h * d_k
        qh = qp_b[:, :, lo:lo + d_k]            # (Bblk, S, d_k) static lane slice
        kh = kp_b[:, :, lo:lo + d_k]
        vh = vp_b[:, :, lo:lo + d_k]

        # scores: batched over Bblk, contracting d_k — no explicit transpose.
        s = jnp.einsum('bqd,bkd->bqk', qh, kh,
                       preferred_element_type=jnp.float32) * scale      # (Bblk,S,S)

        # numerically-stable softmax along the last axis (f32)
        s = s - jnp.max(s, axis=-1, keepdims=True)
        e = jnp.exp(s)
        p = e * pl.reciprocal(jnp.sum(e, axis=-1, keepdims=True), approx=True)

        head_outs.append(
            jnp.einsum('bqk,bkd->bqd', p.astype(jnp.bfloat16), vh,
                       preferred_element_type=jnp.float32))             # (Bblk,S,d_k)

    # Concat heads along the feature (lane) axis, then ONE full-D output
    # projection (K = D contraction) instead of `heads` skinny K=d_k matmuls.
    concat = jnp.concatenate(head_outs, axis=-1).reshape(M, D)
    out = (jnp.dot(concat.astype(jnp.bfloat16), wo_ref[...],
                   preferred_element_type=jnp.float32) + bo_ref[...])

    # Single contiguous slab store per grid step.
    o_ref[...] = out.reshape(Bblk, S, D).astype(o_ref.dtype)


def multi_head_attention(q, k, v, params, *, heads: int, block_b: int | None = None):
    """q,k,v: (B, S, D) float32. params: weights (D,D) as [d_in,d_out], biases (1,D)."""
    B, S, D = q.shape
    assert D % heads == 0
    d_k = D // heads

    if block_b is None:
        # >=2 parallel grid steps when B allows it, so both v7x TensorCores
        # get work (on v5e/v6e the grid is just a loop — no cost).
        block_b = max(1, B // 2)
        while B % block_b:
            block_b -= 1
    assert B % block_b == 0
    grid = (B // block_b,)

    kernel = functools.partial(_mha_kernel, heads=heads, d_k=d_k)

    # Weights hit the MXU in bf16: cast once here (also halves weight DMA).
    # Biases stay f32 (elementwise adds stay f32 for v5e).
    wq = params["wq"].astype(jnp.bfloat16)
    wk = params["wk"].astype(jnp.bfloat16)
    wv = params["wv"].astype(jnp.bfloat16)
    wo = params["wo"].astype(jnp.bfloat16)

    act_spec = pl.BlockSpec((block_b, S, D), lambda b: (b, 0, 0))
    w_spec = pl.BlockSpec((D, D), lambda b: (0, 0))
    b_spec = pl.BlockSpec((1, D), lambda b: (0, 0))

    # Explicit VMEM budget: double-buffered activations/output + weights +
    # biases, with headroom for compiler scratch / intermediates.
    act_bytes = block_b * S * D * 4           # f32 q/k/v/out blocks
    w_bytes = D * D * 2                       # bf16 weights
    bias_bytes = D * 4
    per_step = 2 * (4 * act_bytes + 4 * w_bytes + 4 * bias_bytes)
    vmem_limit_bytes = int(min(100 * 2**20, max(4 * 2**20, 8 * per_step)))

    return pl.pallas_call(
        kernel,
        out_shape=jax.ShapeDtypeStruct((B, S, D), jnp.float32),
        grid_spec=pltpu.PrefetchScalarGridSpec(
            num_scalar_prefetch=0,
            grid=grid,
            in_specs=[act_spec, act_spec, act_spec,
                      w_spec, b_spec,      # q_linear
                      w_spec, b_spec,      # k_linear
                      w_spec, b_spec,      # v_linear
                      w_spec, b_spec],     # out
            out_specs=act_spec,
        ),
        compiler_params=pltpu.CompilerParams(
            dimension_semantics=("parallel",),
            vmem_limit_bytes=vmem_limit_bytes),
    )(q, k, v,
      wq, params["bq"],
      wk, params["bk"],
      wv, params["bv"],
      wo, params["bo"])


def init_params(key, d_model):
    """Deterministic synthetic parameters. Weights stored as [d_in, d_out]."""
    ks = jax.random.split(key, 8)
    lim = 1.0 / math.sqrt(d_model)   # matches nn.Linear default U(-1/sqrt(in), 1/sqrt(in))
    def w(k): return jax.random.uniform(k, (d_model, d_model), jnp.float32, -lim, lim)
    def b(k): return jax.random.uniform(k, (1, d_model), jnp.float32, -lim, lim)
    return {
        "wq": w(ks[0]), "bq": b(ks[1]),
        "wk": w(ks[2]), "bk": b(ks[3]),
        "wv": w(ks[4]), "bv": b(ks[5]),
        "wo": w(ks[6]), "bo": b(ks[7]),
    }


if __name__ == "__main__":
    B, S, D, HEADS = 2, 8, 32, 4

    key = jax.random.PRNGKey(0)
    kq, kk, kv, kp = jax.random.split(key, 4)
    q = jax.random.normal(kq, (B, S, D), jnp.float32)
    k = jax.random.normal(kk, (B, S, D), jnp.float32)
    v = jax.random.normal(kv, (B, S, D), jnp.float32)
    params = init_params(kp, D)

    out = multi_head_attention(q, k, v, params, heads=HEADS)
    out = jax.block_until_ready(out)

    # Reference mirrors the PyTorch forward (eval, mask=None) and rounds matmul
    # operands to bf16 exactly where the kernel does, so the comparison stays
    # tight; remaining diff = EUP approximate reciprocal in the softmax
    # (~1e-3) + f32 accumulation order.
    def ref(q, k, v, p):
        d_k = D // HEADS
        bf = lambda x: x.astype(jnp.bfloat16).astype(jnp.float32)
        def proj(x, w, b): return bf(x) @ bf(w) + b
        qp = proj(q, p["wq"], p["bq"]).reshape(B, S, HEADS, d_k).transpose(0, 2, 1, 3)
        kp_ = proj(k, p["wk"], p["bk"]).reshape(B, S, HEADS, d_k).transpose(0, 2, 1, 3)
        vp = proj(v, p["wv"], p["bv"]).reshape(B, S, HEADS, d_k).transpose(0, 2, 1, 3)
        s = jnp.einsum("bhqd,bhkd->bhqk", bf(qp), bf(kp_)) / math.sqrt(d_k)
        s = jax.nn.softmax(s, axis=-1)
        o = jnp.einsum("bhqk,bhkd->bhqd", bf(s), bf(vp))
        o = o.transpose(0, 2, 1, 3).reshape(B, S, D)
        return bf(o) @ bf(p["wo"]) + p["bo"]

    expected = ref(q, k, v, params)
    assert jnp.allclose(out, expected, atol=1e-2, rtol=1e-2), "mismatch vs reference"

    print("KERNEL_OK")
</pallas_src>

<mosaic_0001>
module attributes {stable_mosaic.version = 11 : i64} {
  func.func @_mha_kernel(%arg0: i32, %arg1: memref<1x8x32xf32, #tpu.memory_space<vmem>>, %arg2: memref<1x8x32xf32, #tpu.memory_space<vmem>>, %arg3: memref<1x8x32xf32, #tpu.memory_space<vmem>>, %arg4: memref<32x32xbf16, #tpu.memory_space<vmem>>, %arg5: memref<1x32xf32, #tpu.memory_space<vmem>>, %arg6: memref<32x32xbf16, #tpu.memory_space<vmem>>, %arg7: memref<1x32xf32, #tpu.memory_space<vmem>>, %arg8: memref<32x32xbf16, #tpu.memory_space<vmem>>, %arg9: memref<1x32xf32, #tpu.memory_space<vmem>>, %arg10: memref<32x32xbf16, #tpu.memory_space<vmem>>, %arg11: memref<1x32xf32, #tpu.memory_space<vmem>>, %arg12: memref<1x8x32xf32, #tpu.memory_space<vmem>>) attributes {dimension_semantics = [#tpu.dimension_semantics<parallel>], iteration_bounds = array<i64: 2>, scalar_prefetch = 0 : i64, scratch_operands = 0 : i64, tpu.core_type = #tpu.core_type<tc>, window_params = [{transform_indices = @transform_0, window_bounds = array<i64: 1, 8, 32>}, {transform_indices = @transform_1, window_bounds = array<i64: 1, 8, 32>}, {transform_indices = @transform_2, window_bounds = array<i64: 1, 8, 32>}, {pipeline_mode = #tpu.pipeline_mode<synchronous>, transform_indices = @transform_3, window_bounds = array<i64: 32, 32>}, {pipeline_mode = #tpu.pipeline_mode<synchronous>, transform_indices = @transform_4, window_bounds = array<i64: 1, 32>}, {pipeline_mode = #tpu.pipeline_mode<synchronous>, transform_indices = @transform_5, window_bounds = array<i64: 32, 32>}, {pipeline_mode = #tpu.pipeline_mode<synchronous>, transform_indices = @transform_6, window_bounds = array<i64: 1, 32>}, {pipeline_mode = #tpu.pipeline_mode<synchronous>, transform_indices = @transform_7, window_bounds = array<i64: 32, 32>}, {pipeline_mode = #tpu.pipeline_mode<synchronous>, transform_indices = @transform_8, window_bounds = array<i64: 1, 32>}, {pipeline_mode = #tpu.pipeline_mode<synchronous>, transform_indices = @transform_9, window_bounds = array<i64: 32, 32>}, {pipeline_mode = #tpu.pipeline_mode<synchronous>, transform_indices = @transform_10, window_bounds = array<i64: 1, 32>}, {transform_indices = @transform_11, window_bounds = array<i64: 1, 8, 32>}]} {
    %c0 = arith.constant 0 : index
    %c0_0 = arith.constant 0 : index
    %c0_1 = arith.constant 0 : index
    %0 = vector.load %arg1[%c0, %c0_0, %c0_1] : memref<1x8x32xf32, #tpu.memory_space<vmem>>, vector<1x8x32xf32>
    %1 = vector.shape_cast %0 : vector<1x8x32xf32> to vector<8x32xf32>
    %2 = arith.truncf %1 : vector<8x32xf32> to vector<8x32xbf16>
    %c0_2 = arith.constant 0 : index
    %c0_3 = arith.constant 0 : index
    %c0_4 = arith.constant 0 : index
    %3 = vector.load %arg2[%c0_2, %c0_3, %c0_4] : memref<1x8x32xf32, #tpu.memory_space<vmem>>, vector<1x8x32xf32>
    %4 = vector.shape_cast %3 : vector<1x8x32xf32> to vector<8x32xf32>
    %5 = arith.truncf %4 : vector<8x32xf32> to vector<8x32xbf16>
    %c0_5 = arith.constant 0 : index
    %c0_6 = arith.constant 0 : index
    %c0_7 = arith.constant 0 : index
    %6 = vector.load %arg3[%c0_5, %c0_6, %c0_7] : memref<1x8x32xf32, #tpu.memory_space<vmem>>, vector<1x8x32xf32>
    %7 = vector.shape_cast %6 : vector<1x8x32xf32> to vector<8x32xf32>
    %8 = arith.truncf %7 : vector<8x32xf32> to vector<8x32xbf16>
    %c0_8 = arith.constant 0 : index
    %c0_9 = arith.constant 0 : index
    %9 = vector.load %arg4[%c0_8, %c0_9] : memref<32x32xbf16, #tpu.memory_space<vmem>>, vector<32x32xbf16>
    %cst = arith.constant dense<0.000000e+00> : vector<8x32xf32>
    %10 = tpu.matmul %2, %9, %cst {dimension_numbers = #tpu.dot_dimension_numbers<[1], [0], [0], [1], [0, 0, 1, 1], [], []>} : vector<8x32xbf16>, vector<32x32xbf16>, vector<8x32xf32> -> vector<8x32xf32>
    %c0_10 = arith.constant 0 : index
    %c0_11 = arith.constant 0 : index
    %11 = vector.load %arg5[%c0_10, %c0_11] : memref<1x32xf32, #tpu.memory_space<vmem>>, vector<1x32xf32>
    %12 = vector.broadcast %11 : vector<1x32xf32> to vector<8x32xf32>
    %13 = arith.addf %10, %12 : vector<8x32xf32>
    %c0_12 = arith.constant 0 : index
    %c0_13 = arith.constant 0 : index
    %14 = vector.load %arg6[%c0_12, %c0_13] : memref<32x32xbf16, #tpu.memory_space<vmem>>, vector<32x32xbf16>
    %cst_14 = arith.constant dense<0.000000e+00> : vector<8x32xf32>
    %15 = tpu.matmul %5, %14, %cst_14 {dimension_numbers = #tpu.dot_dimension_numbers<[1], [0], [0], [1], [0, 0, 1, 1], [], []>} : vector<8x32xbf16>, vector<32x32xbf16>, vector<8x32xf32> -> vector<8x32xf32>
    %c0_15 = arith.constant 0 : index
    %c0_16 = arith.constant 0 : index
    %16 = vector.load %arg7[%c0_15, %c0_16] : memref<1x32xf32, #tpu.memory_space<vmem>>, vector<1x32xf32>
    %17 = vector.broadcast %16 : vector<1x32xf32> to vector<8x32xf32>
    %18 = arith.addf %15, %17 : vector<8x32xf32>
    %c0_17 = arith.constant 0 : index
    %c0_18 = arith.constant 0 : index
    %19 = vector.load %arg8[%c0_17, %c0_18] : memref<32x32xbf16, #tpu.memory_space<vmem>>, vector<32x32xbf16>
    %cst_19 = arith.constant dense<0.000000e+00> : vector<8x32xf32>
    %20 = tpu.matmul %8, %19, %cst_19 {dimension_numbers = #tpu.dot_dimension_numbers<[1], [0], [0], [1], [0, 0, 1, 1], [], []>} : vector<8x32xbf16>, vector<32x32xbf16>, vector<8x32xf32> -> vector<8x32xf32>
    %c0_20 = arith.constant 0 : index
    %c0_21 = arith.constant 0 : index
    %21 = vector.load %arg9[%c0_20, %c0_21] : memref<1x32xf32, #tpu.memory_space<vmem>>, vector<1x32xf32>
    %22 = vector.broadcast %21 : vector<1x32xf32> to vector<8x32xf32>
    %23 = arith.addf %20, %22 : vector<8x32xf32>
    %24 = arith.truncf %13 : vector<8x32xf32> to vector<8x32xbf16>
    %25 = vector.shape_cast %24 : vector<8x32xbf16> to vector<1x8x32xbf16>
    %26 = arith.truncf %18 : vector<8x32xf32> to vector<8x32xbf16>
    %27 = vector.shape_cast %26 : vector<8x32xbf16> to vector<1x8x32xbf16>
    %28 = arith.truncf %23 : vector<8x32xf32> to vector<8x32xbf16>
    %29 = vector.shape_cast %28 : vector<8x32xbf16> to vector<1x8x32xbf16>
    %30 = vector.extract_strided_slice %25 {offsets = [0, 0, 0], sizes = [1, 8, 8], strides = [1, 1, 1]} : vector<1x8x32xbf16> to vector<1x8x8xbf16>
    %31 = vector.extract_strided_slice %27 {offsets = [0, 0, 0], sizes = [1, 8, 8], strides = [1, 1, 1]} : vector<1x8x32xbf16> to vector<1x8x8xbf16>
    %32 = vector.extract_strided_slice %29 {offsets = [0, 0, 0], sizes = [1, 8, 8], strides = [1, 1, 1]} : vector<1x8x32xbf16> to vector<1x8x8xbf16>
    "tpu.trace_start"() <{level = 10 : i32, message = "bqd,bkd->bqk"}> : () -> ()
    %cst_22 = arith.constant dense<0.000000e+00> : vector<1x8x8xf32>
    %33 = tpu.matmul %30, %31, %cst_22 {dimension_numbers = #tpu.dot_dimension_numbers<[2], [2], [1], [1], [0, 0, 0, 1, 1, 1], [0], [0]>} : vector<1x8x8xbf16>, vector<1x8x8xbf16>, vector<1x8x8xf32> -> vector<1x8x8xf32>
    "tpu.trace_stop"() : () -> ()
    %cst_23 = arith.constant 0.353553385 : f32
    %34 = vector.broadcast %cst_23 : f32 to vector<1x8x8xf32>
    %35 = arith.mulf %33, %34 : vector<1x8x8xf32>
    %cst_24 = arith.constant dense<0xFF800000> : vector<1x8xf32>
    %36 = vector.multi_reduction <maximumf>, %35, %cst_24 [2] : vector<1x8x8xf32> to vector<1x8xf32>
    %37 = vector.shape_cast %36 : vector<1x8xf32> to vector<1x8x1xf32>
    %38 = vector.broadcast %37 : vector<1x8x1xf32> to vector<1x8x8xf32>
    %39 = arith.subf %35, %38 : vector<1x8x8xf32>
    %40 = math.exp %39 : vector<1x8x8xf32>
    %cst_25 = arith.constant dense<0.000000e+00> : vector<1x8xf32>
    %41 = vector.multi_reduction <add>, %40, %cst_25 [2] : vector<1x8x8xf32> to vector<1x8xf32>
    %42 = vector.shape_cast %41 : vector<1x8xf32> to vector<1x8x1xf32>
    %43 = tpu.reciprocal %42 {approx = true} : vector<1x8x1xf32> -> vector<1x8x1xf32>
    %44 = vector.broadcast %43 : vector<1x8x1xf32> to vector<1x8x8xf32>
    %45 = arith.mulf %40, %44 : vector<1x8x8xf32>
    %46 = arith.truncf %45 : vector<1x8x8xf32> to vector<1x8x8xbf16>
    "tpu.trace_start"() <{level = 10 : i32, message = "bqk,bkd->bqd"}> : () -> ()
    %cst_26 = arith.constant dense<0.000000e+00> : vector<1x8x8xf32>
    %47 = tpu.matmul %46, %32, %cst_26 {dimension_numbers = #tpu.dot_dimension_numbers<[2], [1], [1], [2], [0, 0, 0, 1, 1, 2], [0], [0]>} : vector<1x8x8xbf16>, vector<1x8x8xbf16>, vector<1x8x8xf32> -> vector<1x8x8xf32>
    "tpu.trace_stop"() : () -> ()
    %48 = vector.extract_strided_slice %25 {offsets = [0, 0, 8], sizes = [1, 8, 8], strides = [1, 1, 1]} : vector<1x8x32xbf16> to vector<1x8x8xbf16>
    %49 = vector.extract_strided_slice %27 {offsets = [0, 0, 8], sizes = [1, 8, 8], strides = [1, 1, 1]} : vector<1x8x32xbf16> to vector<1x8x8xbf16>
    %50 = vector.extract_strided_slice %29 {offsets = [0, 0, 8], sizes = [1, 8, 8], strides = [1, 1, 1]} : vector<1x8x32xbf16> to vector<1x8x8xbf16>
    "tpu.trace_start"() <{level = 10 : i32, message = "bqd,bkd->bqk"}> : () -> ()
    %cst_27 = arith.constant dense<0.000000e+00> : vector<1x8x8xf32>
    %51 = tpu.matmul %48, %49, %cst_27 {dimension_numbers = #tpu.dot_dimension_numbers<[2], [2], [1], [1], [0, 0, 0, 1, 1, 1], [0], [0]>} : vector<1x8x8xbf16>, vector<1x8x8xbf16>, vector<1x8x8xf32> -> vector<1x8x8xf32>
    "tpu.trace_stop"() : () -> ()
    %cst_28 = arith.constant 0.353553385 : f32
    %52 = vector.broadcast %cst_28 : f32 to vector<1x8x8xf32>
    %53 = arith.mulf %51, %52 : vector<1x8x8xf32>
    %cst_29 = arith.constant dense<0xFF800000> : vector<1x8xf32>
    %54 = vector.multi_reduction <maximumf>, %53, %cst_29 [2] : vector<1x8x8xf32> to vector<1x8xf32>
    %55 = vector.shape_cast %54 : vector<1x8xf32> to vector<1x8x1xf32>
    %56 = vector.broadcast %55 : vector<1x8x1xf32> to vector<1x8x8xf32>
    %57 = arith.subf %53, %56 : vector<1x8x8xf32>
    %58 = math.exp %57 : vector<1x8x8xf32>
    %cst_30 = arith.constant dense<0.000000e+00> : vector<1x8xf32>
    %59 = vector.multi_reduction <add>, %58, %cst_30 [2] : vector<1x8x8xf32> to vector<1x8xf32>
    %60 = vector.shape_cast %59 : vector<1x8xf32> to vector<1x8x1xf32>
    %61 = tpu.reciprocal %60 {approx = true} : vector<1x8x1xf32> -> vector<1x8x1xf32>
    %62 = vector.broadcast %61 : vector<1x8x1xf32> to vector<1x8x8xf32>
    %63 = arith.mulf %58, %62 : vector<1x8x8xf32>
    %64 = arith.truncf %63 : vector<1x8x8xf32> to vector<1x8x8xbf16>
    "tpu.trace_start"() <{level = 10 : i32, message = "bqk,bkd->bqd"}> : () -> ()
    %cst_31 = arith.constant dense<0.000000e+00> : vector<1x8x8xf32>
    %65 = tpu.matmul %64, %50, %cst_31 {dimension_numbers = #tpu.dot_dimension_numbers<[2], [1], [1], [2], [0, 0, 0, 1, 1, 2], [0], [0]>} : vector<1x8x8xbf16>, vector<1x8x8xbf16>, vector<1x8x8xf32> -> vector<1x8x8xf32>
    "tpu.trace_stop"() : () -> ()
    %66 = vector.extract_strided_slice %25 {offsets = [0, 0, 16], sizes = [1, 8, 8], strides = [1, 1, 1]} : vector<1x8x32xbf16> to vector<1x8x8xbf16>
    %67 = vector.extract_strided_slice %27 {offsets = [0, 0, 16], sizes = [1, 8, 8], strides = [1, 1, 1]} : vector<1x8x32xbf16> to vector<1x8x8xbf16>
    %68 = vector.extract_strided_slice %29 {offsets = [0, 0, 16], sizes = [1, 8, 8], strides = [1, 1, 1]} : vector<1x8x32xbf16> to vector<1x8x8xbf16>
    "tpu.trace_start"() <{level = 10 : i32, message = "bqd,bkd->bqk"}> : () -> ()
    %cst_32 = arith.constant dense<0.000000e+00> : vector<1x8x8xf32>
    %69 = tpu.matmul %66, %67, %cst_32 {dimension_numbers = #tpu.dot_dimension_numbers<[2], [2], [1], [1], [0, 0, 0, 1, 1, 1], [0], [0]>} : vector<1x8x8xbf16>, vector<1x8x8xbf16>, vector<1x8x8xf32> -> vector<1x8x8xf32>
    "tpu.trace_stop"() : () -> ()
    %cst_33 = arith.constant 0.353553385 : f32
    %70 = vector.broadcast %cst_33 : f32 to vector<1x8x8xf32>
    %71 = arith.mulf %69, %70 : vector<1x8x8xf32>
    %cst_34 = arith.constant dense<0xFF800000> : vector<1x8xf32>
    %72 = vector.multi_reduction <maximumf>, %71, %cst_34 [2] : vector<1x8x8xf32> to vector<1x8xf32>
    %73 = vector.shape_cast %72 : vector<1x8xf32> to vector<1x8x1xf32>
    %74 = vector.broadcast %73 : vector<1x8x1xf32> to vector<1x8x8xf32>
    %75 = arith.subf %71, %74 : vector<1x8x8xf32>
    %76 = math.exp %75 : vector<1x8x8xf32>
    %cst_35 = arith.constant dense<0.000000e+00> : vector<1x8xf32>
    %77 = vector.multi_reduction <add>, %76, %cst_35 [2] : vector<1x8x8xf32> to vector<1x8xf32>
    %78 = vector.shape_cast %77 : vector<1x8xf32> to vector<1x8x1xf32>
    %79 = tpu.reciprocal %78 {approx = true} : vector<1x8x1xf32> -> vector<1x8x1xf32>
    %80 = vector.broadcast %79 : vector<1x8x1xf32> to vector<1x8x8xf32>
    %81 = arith.mulf %76, %80 : vector<1x8x8xf32>
    %82 = arith.truncf %81 : vector<1x8x8xf32> to vector<1x8x8xbf16>
    "tpu.trace_start"() <{level = 10 : i32, message = "bqk,bkd->bqd"}> : () -> ()
    %cst_36 = arith.constant dense<0.000000e+00> : vector<1x8x8xf32>
    %83 = tpu.matmul %82, %68, %cst_36 {dimension_numbers = #tpu.dot_dimension_numbers<[2], [1], [1], [2], [0, 0, 0, 1, 1, 2], [0], [0]>} : vector<1x8x8xbf16>, vector<1x8x8xbf16>, vector<1x8x8xf32> -> vector<1x8x8xf32>
    "tpu.trace_stop"() : () -> ()
    %84 = vector.extract_strided_slice %25 {offsets = [0, 0, 24], sizes = [1, 8, 8], strides = [1, 1, 1]} : vector<1x8x32xbf16> to vector<1x8x8xbf16>
    %85 = vector.extract_strided_slice %27 {offsets = [0, 0, 24], sizes = [1, 8, 8], strides = [1, 1, 1]} : vector<1x8x32xbf16> to vector<1x8x8xbf16>
    %86 = vector.extract_strided_slice %29 {offsets = [0, 0, 24], sizes = [1, 8, 8], strides = [1, 1, 1]} : vector<1x8x32xbf16> to vector<1x8x8xbf16>
    "tpu.trace_start"() <{level = 10 : i32, message = "bqd,bkd->bqk"}> : () -> ()
    %cst_37 = arith.constant dense<0.000000e+00> : vector<1x8x8xf32>
    %87 = tpu.matmul %84, %85, %cst_37 {dimension_numbers = #tpu.dot_dimension_numbers<[2], [2], [1], [1], [0, 0, 0, 1, 1, 1], [0], [0]>} : vector<1x8x8xbf16>, vector<1x8x8xbf16>, vector<1x8x8xf32> -> vector<1x8x8xf32>
    "tpu.trace_stop"() : () -> ()
    %cst_38 = arith.constant 0.353553385 : f32
    %88 = vector.broadcast %cst_38 : f32 to vector<1x8x8xf32>
    %89 = arith.mulf %87, %88 : vector<1x8x8xf32>
    %cst_39 = arith.constant dense<0xFF800000> : vector<1x8xf32>
    %90 = vector.multi_reduction <maximumf>, %89, %cst_39 [2] : vector<1x8x8xf32> to vector<1x8xf32>
    %91 = vector.shape_cast %90 : vector<1x8xf32> to vector<1x8x1xf32>
    %92 = vector.broadcast %91 : vector<1x8x1xf32> to vector<1x8x8xf32>
    %93 = arith.subf %89, %92 : vector<1x8x8xf32>
    %94 = math.exp %93 : vector<1x8x8xf32>
    %cst_40 = arith.constant dense<0.000000e+00> : vector<1x8xf32>
    %95 = vector.multi_reduction <add>, %94, %cst_40 [2] : vector<1x8x8xf32> to vector<1x8xf32>
    %96 = vector.shape_cast %95 : vector<1x8xf32> to vector<1x8x1xf32>
    %97 = tpu.reciprocal %96 {approx = true} : vector<1x8x1xf32> -> vector<1x8x1xf32>
    %98 = vector.broadcast %97 : vector<1x8x1xf32> to vector<1x8x8xf32>
    %99 = arith.mulf %94, %98 : vector<1x8x8xf32>
    %100 = arith.truncf %99 : vector<1x8x8xf32> to vector<1x8x8xbf16>
    "tpu.trace_start"() <{level = 10 : i32, message = "bqk,bkd->bqd"}> : () -> ()
    %cst_41 = arith.constant dense<0.000000e+00> : vector<1x8x8xf32>
    %101 = tpu.matmul %100, %86, %cst_41 {dimension_numbers = #tpu.dot_dimension_numbers<[2], [1], [1], [2], [0, 0, 0, 1, 1, 2], [0], [0]>} : vector<1x8x8xbf16>, vector<1x8x8xbf16>, vector<1x8x8xf32> -> vector<1x8x8xf32>
    "tpu.trace_stop"() : () -> ()
    %102 = tpu.concatenate %47, %65, %83, %101 in 2 : vector<1x8x8xf32>, vector<1x8x8xf32>, vector<1x8x8xf32>, vector<1x8x8xf32> -> vector<1x8x32xf32>
    %103 = vector.shape_cast %102 : vector<1x8x32xf32> to vector<8x32xf32>
    %104 = arith.truncf %103 : vector<8x32xf32> to vector<8x32xbf16>
    %c0_42 = arith.constant 0 : index
    %c0_43 = arith.constant 0 : index
    %105 = vector.load %arg10[%c0_42, %c0_43] : memref<32x32xbf16, #tpu.memory_space<vmem>>, vector<32x32xbf16>
    %cst_44 = arith.constant dense<0.000000e+00> : vector<8x32xf32>
    %106 = tpu.matmul %104, %105, %cst_44 {dimension_numbers = #tpu.dot_dimension_numbers<[1], [0], [0], [1], [0, 0, 1, 1], [], []>} : vector<8x32xbf16>, vector<32x32xbf16>, vector<8x32xf32> -> vector<8x32xf32>
    %c0_45 = arith.constant 0 : index
    %c0_46 = arith.constant 0 : index
    %107 = vector.load %arg11[%c0_45, %c0_46] : memref<1x32xf32, #tpu.memory_space<vmem>>, vector<1x32xf32>
    %108 = vector.broadcast %107 : vector<1x32xf32> to vector<8x32xf32>
    %109 = arith.addf %106, %108 : vector<8x32xf32>
    %110 = vector.shape_cast %109 : vector<8x32xf32> to vector<1x8x32xf32>
    %c0_47 = arith.constant 0 : index
    %c0_48 = arith.constant 0 : index
    %c0_49 = arith.constant 0 : index
    %111 = vector.load %arg12[%c0_47, %c0_48, %c0_49] : memref<1x8x32xf32, #tpu.memory_space<vmem>>, vector<1x8x32xf32>
    tpu.vector_store %arg12[%c0_47, %c0_48, %c0_49], %110 {strides = array<i32>} : memref<1x8x32xf32, #tpu.memory_space<vmem>>, vector<1x8x32xf32>,
    return
  }
  func.func @transform_0(%arg0: i32) -> (i32, i32, i32) {
    %c0_i32 = arith.constant 0 : i32
    %c0_i32_0 = arith.constant 0 : i32
    %c0_i32_1 = arith.constant 0 : i32
    return %arg0, %c0_i32, %c0_i32_0 : i32, i32, i32
  }
  func.func @transform_1(%arg0: i32) -> (i32, i32, i32) {
    %c0_i32 = arith.constant 0 : i32
    %c0_i32_0 = arith.constant 0 : i32
    %c0_i32_1 = arith.constant 0 : i32
    return %arg0, %c0_i32, %c0_i32_0 : i32, i32, i32
  }
  func.func @transform_2(%arg0: i32) -> (i32, i32, i32) {
    %c0_i32 = arith.constant 0 : i32
    %c0_i32_0 = arith.constant 0 : i32
    %c0_i32_1 = arith.constant 0 : i32
    return %arg0, %c0_i32, %c0_i32_0 : i32, i32, i32
  }
  func.func @transform_3(%arg0: i32) -> (i32, i32) {
    %c0_i32 = arith.constant 0 : i32
    %c0_i32_0 = arith.constant 0 : i32
    %c0_i32_1 = arith.constant 0 : i32
    return %c0_i32, %c0_i32_0 : i32, i32
  }
  func.func @transform_4(%arg0: i32) -> (i32, i32) {
    %c0_i32 = arith.constant 0 : i32
    %c0_i32_0 = arith.constant 0 : i32
    %c0_i32_1 = arith.constant 0 : i32
    return %c0_i32, %c0_i32_0 : i32, i32
  }
  func.func @transform_5(%arg0: i32) -> (i32, i32) {
    %c0_i32 = arith.constant 0 : i32
    %c0_i32_0 = arith.constant 0 : i32
    %c0_i32_1 = arith.constant 0 : i32
    return %c0_i32, %c0_i32_0 : i32, i32
  }
  func.func @transform_6(%arg0: i32) -> (i32, i32) {
    %c0_i32 = arith.constant 0 : i32
    %c0_i32_0 = arith.constant 0 : i32
    %c0_i32_1 = arith.constant 0 : i32
    return %c0_i32, %c0_i32_0 : i32, i32
  }
  func.func @transform_7(%arg0: i32) -> (i32, i32) {
    %c0_i32 = arith.constant 0 : i32
    %c0_i32_0 = arith.constant 0 : i32
    %c0_i32_1 = arith.constant 0 : i32
    return %c0_i32, %c0_i32_0 : i32, i32
  }
  func.func @transform_8(%arg0: i32) -> (i32, i32) {
    %c0_i32 = arith.constant 0 : i32
    %c0_i32_0 = arith.constant 0 : i32
    %c0_i32_1 = arith.constant 0 : i32
    return %c0_i32, %c0_i32_0 : i32, i32
  }
  func.func @transform_9(%arg0: i32) -> (i32, i32) {
    %c0_i32 = arith.constant 0 : i32
    %c0_i32_0 = arith.constant 0 : i32
    %c0_i32_1 = arith.constant 0 : i32
    return %c0_i32, %c0_i32_0 : i32, i32
  }
  func.func @transform_10(%arg0: i32) -> (i32, i32) {
    %c0_i32 = arith.constant 0 : i32
    %c0_i32_0 = arith.constant 0 : i32
    %c0_i32_1 = arith.constant 0 : i32
    return %c0_i32, %c0_i32_0 : i32, i32
  }
  func.func @transform_11(%arg0: i32) -> (i32, i32, i32) {
    %c0_i32 = arith.constant 0 : i32
    %c0_i32_0 = arith.constant 0 : i32
    %c0_i32_1 = arith.constant 0 : i32
    return %arg0, %c0_i32, %c0_i32_0 : i32, i32, i32
  }
}

</mosaic_0001>

<bundles_post_ra>
// kernel: tpu_custom_call.1
= control target key start
LH: loop header
LB: loop body
LE: loop exit
PB: predicated region body
PF: predicated region fallthrough
CT: control target
= control target key end

     0   :  { %s1971_s0 = inlined_call_operand.hbm [shape: f32[2,8,32], index: 0, kind: input, shape index: {}]   ;;  %s1972_s1 = inlined_call_operand.hbm [shape: f32[2,8,32], index: 1, kind: input, shape index: {}]   ;;  %s1973_s2 = inlined_call_operand.hbm [shape: f32[2,8,32], index: 2, kind: input, shape index: {}]   ;;  %s1974_s3 = inlined_call_operand.hbm [shape: bf16[32,32], index: 3, kind: input, shape index: {}]   ;;  %s1975_s4 = inlined_call_operand.vmem [shape: f32[1,32], index: 4, kind: input, shape index: {}]   ;;  %s1976_s5 = inlined_call_operand.hbm [shape: bf16[32,32], index: 5, kind: input, shape index: {}]   ;;  %s1977_s6 = inlined_call_operand.vmem [shape: f32[1,32], index: 6, kind: input, shape index: {}]   ;;  %s1978_s7 = inlined_call_operand.hbm [shape: bf16[32,32], index: 7, kind: input, shape index: {}]   ;;  %s1979_s8 = inlined_call_operand.vmem [shape: f32[1,32], index: 8, kind: input, shape index: {}]   ;;  %s1980_s9 = inlined_call_operand.hbm [shape: bf16[32,32], index: 9, kind: input, shape index: {}]   ;;  %s1981_s10 = inlined_call_operand.vmem [shape: f32[1,32], index: 10, kind: input, shape index: {}]   ;;  %s1982_s11 = inlined_call_operand.hbm [shape: f32[2,8,32], index: 11, kind: output, shape index: {}]  }
   0x1   :  { %1994 = sst [smem:[#allocation25_spill]] %s1972_s1 }
   0x2   :  { %1995 = sst [smem:[#allocation26_spill]] %s1974_s3 }
   0x3   :  { %1996 = sst [smem:[#allocation27_spill]] %s1976_s5 }
   0x4   :  { %1997 = sst [smem:[#allocation28_spill]] %s1978_s7 }
   0x5   :  { %1998 = sst [smem:[#allocation29_spill]] %s1980_s9 }
   0x6   :  { %1999 = sst [smem:[#allocation30_spill]] %s1981_s10 }
   0x7   :  { %16 = vsyncpa [#allocation3], 0 }
   0x8   :  { %18 = vsyncpa [#allocation3 + $0x1], 0 }
   0x9   :  { %19 = vsyncpa [#allocation6], 0 }
   0xa   :  { %21 = vsyncpa [#allocation6 + $0x1], 0 }
   0xb   :  { %22 = vsyncpa [#allocation9], 0 }
   0xc   :  { %23 = vsyncpa [#allocation12], 0 }
   0xd   :  { %24 = vsyncpa [#allocation4], 0 }
   0xe   :  { %26 = vsyncpa [#allocation4 + $0x1], 0  ;;  %s1684_s17 = smov 0   ;;  %s1686_s18 = smov 0  }
   0xf   :  { %s1688_s19 = smov 0   ;;  %s1690_s20 = smov 0  }
  0x10 LB: > { %2000 = sst [smem:[#allocation20_spill]] %s1598_s17  ;;  %s1708_s24 = sadd.s32 4294967295, %s1610_s20   ;;  %s1610_s20 = sphi %s1690_s20, %s2028_s20   ;;  %s1606_s19 = sphi %s1688_s19, %s2032_s19   ;;  %s1602_s18 = sphi %s1686_s18, %s2031_s18   ;;  %s1598_s17 = sphi %s1684_s17, %s2030_s17  }
  0x11   : > { %2001 = sst [smem:[#allocation21_spill]] %s1610_s20  ;;  %p1120_p0 = scmp.ge.s32.totalorder %s1610_s20, 1 }
  0x12   : > { %s2002_s3 = sld [smem:[#allocation26_spill]]  ;;  %p1993_p1 = scmp.eq.s32.totalorder %s1708_s24, 0 }
  0x13   : > { %p309_p2 = scmp.lt.s32.totalorder %s1610_s20, 3  ;;  %s1612_s26 = smov [#allocation8]  }
  0x14   : > { %s322_s27 = sshll.u32 %s1612_s26, 4  ;;  %s2004_s7 = sld [smem:[#allocation28_spill]]  ;;  %s323_s27 = int_to_ptr.vmem [resolvable:$true] %s322_s27 }
  0x15   : > { %p1713_p3 = pnand %p1120_p0, %p309_p2  ;;  %s1613_s13 = smov [#allocation11]  }
  0x16   : > { %s356_s14 = sshll.u32 %s1613_s13, 4  ;;  %s1983_s15 = smov 64   ;;  %s357_s14 = int_to_ptr.vmem [resolvable:$true] %s356_s14 }
  0x17   : > { %p1221_p4 = pneg %p1713_p3  ;;  %s1985_s16 = smov 4  }
  0x18   : > { %s320_s23 = sshll.u32 %s2002_s3, 4  ;;  %s1119_s21 = sadd.s32 4294967294, %s1610_s20   ;;  %s321_s23 = int_to_ptr.hbm [resolvable:$true] %s320_s23 }
  0x19   : > { %p1725_p6 = pnand %p1221_p4, %p1993_p1  ;;  %s1741_s22 = sadd.s32 1, %s1610_s20  }
  0x1a   : > { %s354_s30 = sshll.u32 %s2004_s7, 4  ;;  %2006 = sst [smem:[#allocation22_spill]] %s1741_s22  ;;  %s355_s30 = int_to_ptr.hbm [resolvable:$true] %s354_s30 }
  0x1b   : > { %1224 = dma.hbm_to_vmem [thread:$0]  (!%p1725_p6), %s321_s23, 256, %s323_s27, [#allocation9], %s1983_s15, %s1983_s15, %s1985_s16  }
  0x1c   : > { %1230 = dma.hbm_to_vmem [thread:$0]  (!%p1725_p6), %s355_s30, 256, %s357_s14, [#allocation12], %s1983_s15, %s1983_s15, %s1985_s16  }
  0x1d   : > { %s36_s26 = ssub.s32 %s1610_s20, %s1741_s22  ;;  %s39_s28 = sadd.s32 1, %s1606_s19 }
  0x1e   : > { %p37_p7 = scmp.eq.s32.totalorder %s36_s26, 0  ;;  %p46_p8 = scmp.ne.s32.totalorder %s1606_s19, %s1602_s18 }
  0x1f   : > { %p47_p9 = scmp.eq.s32.totalorder %s1610_s20, 0  ;;  %p52_p10 = scmp.ne.s32.totalorder %s1602_s18, %s1598_s17 }
  0x20   : > { %s1752_s23 = scalar_select %p37_p7, %s1606_s19, %s39_s28  }
  0x21   : > { %p48_p11 = por %p47_p9, %p46_p8  ;;  %p1756_p12 = por %p1993_p1, %p52_p10 }
  0x22   : > { %2007 = sst [smem:[#allocation23_spill]] %s1752_s23  ;;  %p296_p13 = scmp.eq.s32.totalorder %s1708_s24, 1 }
  0x23   : > { %p302_p0 = scmp.eq.s32.totalorder %s1119_s21, 1  ;;  %p1252_p2 = scmp.lt.s32.totalorder %s1610_s20, 2 }
  0x24   : > { %s1989_s29 = sand.u32 1, %s1606_s19   ;;  %p1763_p4 = por %p296_p13, %p46_p8 }
  0x25   : > { %p1767_p5 = por %p302_p0, %p52_p10  ;;  %s1773_s14 = sshll.u32 %s1989_s29, 3 }
  0x26   : > { %s1776_s26 = sshll.u32 %s1610_s20, 3  ;;  %p1778_p7 = pnand %p1252_p2, %p48_p11 }
  0x27   : > { %s2010_s13 = scalar_select %p1767_p5, 1, 0 }
  0x28   : > { %s409_s21 = sand.u32 1, %s1610_s20   ;;  %s2013_s1 = sld [smem:[#allocation25_spill]] }
  0x29   : > { %2011 = sst [smem:[#allocation24_spill]] %s2010_s13  ;;  %s413_s23 = scalar_lea.vmem [#allocation5], %s1773_s14 }
  0x2a   : > { %s421_s22 = sshll.u32 %s413_s23, 4  ;;  %s1788_s29 = scalar_lea.sflag [#allocation6], %s409_s21  ;;  %s422_s22 = int_to_ptr.vmem [resolvable:$true] %s421_s22 }
  0x2b   : > { %p1386_p9 = pneg %p1778_p7 }
  0x2e   : > { %s417_s3 = scalar_lea.hbm %s2013_s1, %s1776_s26 }
  0x2f   : > { %s419_s7 = sshll.u32 %s417_s3, 4  ;;  %s1389_s3 = scalar_lea.hbm %s2013_s1, 16  ;;  %s420_s7 = int_to_ptr.hbm [resolvable:$true] %s419_s7 }
  0x30   : > { %s1382_s13 = sshra.s32 %s420_s7, 4  ;;  %s1383_s13 = int_to_ptr.hbm [resolvable:$true] %s1382_s13 }
  0x31   : > { %s1384_s17 = scalar_lea.hbm %s1383_s13, 8  ;;  %p1390_p13 = scmp.lt.s32.totalorder %s1383_s13, %s2013_s1 }
  0x32   : > { %p1385_p8 = scmp.ne.s32.totalorder %s1383_s13, %s1384_s17  ;;  %p1391_p0 = scmp.lt.s32.totalorder %s1389_s3, %s1384_s17 }
  0x34   : > { %p1387_p10 = pnand %p1386_p9, %p1385_p8  ;;  %p1392_p2 = por %p1391_p0, %p1390_p13 }
  0x36   : > { %p1388_p11 = pneg %p1387_p10 }
  0x38   : > { %p1393_p1 = pnand %p1392_p2, %p1388_p11 }
  0x3a   : > { %1396 = shalt.err (!%p1393_p1)
}
  0x3b   : > { %1240 = dma.hbm_to_vmem [thread:$0]  (!%p1778_p7), %s420_s7, 128, %s422_s22, %s1788_s29  }
  0x3c   : > { %s2014_s5 = sld [smem:[#allocation27_spill]]  ;;  %s1616_s15 = smov [#allocation10]  }
  0x3d   : > { %s339_s13 = sshll.u32 %s1616_s15, 4  ;;  %s2015_s9 = sld [smem:[#allocation29_spill]]  ;;  %s340_s13 = int_to_ptr.vmem [resolvable:$true] %s339_s13 }
  0x3e   : > { %s2016_s23 = smov 4   ;;  %s2017_s1 = smov 64  }
  0x3f   : > { %s1617_s7 = smov [#allocation13]   ;;  %s398_s15 = scalar_lea.hbm %s1971_s0, %s1776_s26 }
  0x40   : > { %s373_s22 = sshll.u32 %s1617_s7, 4  ;;  %s394_s17 = scalar_lea.vmem [#allocation2], %s1773_s14  ;;  %s374_s22 = int_to_ptr.vmem [resolvable:$true] %s373_s22 }
  0x41   : > { %s402_s3 = sshll.u32 %s394_s17, 4  ;;  %s403_s3 = int_to_ptr.vmem [resolvable:$true] %s402_s3 }
  0x42   : > { %s337_s20 = sshll.u32 %s2014_s5, 4  ;;  %s400_s5 = sshll.u32 %s398_s15, 4  ;;  %s338_s20 = int_to_ptr.hbm [resolvable:$true] %s337_s20  ;;  %s401_s5 = int_to_ptr.hbm [resolvable:$true] %s400_s5 }
  0x43   : > { %s371_s16 = sshll.u32 %s2015_s9, 4  ;;  %s1472_s9 = sshra.s32 %s401_s5, 4  ;;  %s372_s16 = int_to_ptr.hbm [resolvable:$true] %s371_s16  ;;  %s1473_s9 = int_to_ptr.hbm [resolvable:$true] %s1472_s9 }
  0x44   : > { %1227 = dma.hbm_to_vmem [thread:$0]  (!%p1725_p6), %s338_s20, 256, %s340_s13, [#allocation9], %s2017_s1, %s2017_s1, %s2016_s23  }
  0x45   : > { %1233 = dma.hbm_to_vmem [thread:$0]  (!%p1725_p6), %s372_s16, 256, %s374_s22, [#allocation12], %s2017_s1, %s2017_s1, %s2016_s23  }
  0x46   : > { %s2018_s20 = sand.u32 1, %s1606_s19   ;;  %s1474_s7 = scalar_lea.hbm %s1473_s9, 8 }
  0x47   : > { %s391_s13 = scalar_lea.sflag [#allocation3], %s2018_s20  ;;  %p1475_p1 = scmp.ne.s32.totalorder %s1473_s9, %s1474_s7 }
  0x48   : > { %s1479_s16 = scalar_lea.hbm %s1971_s0, 16  ;;  %p1480_p6 = scmp.lt.s32.totalorder %s1473_s9, %s1971_s0 }
  0x49   : > { %p1477_p8 = pnand %p1475_p1, %p1386_p9  ;;  %p1481_p11 = scmp.lt.s32.totalorder %s1479_s16, %s1474_s7 }
  0x4b   : > { %p1478_p10 = pneg %p1477_p8  ;;  %p1482_p13 = por %p1481_p11, %p1480_p6 }
  0x4d   : > { %p1483_p0 = pnand %p1482_p13, %p1478_p10 }
  0x4f   : > { %1486 = shalt.err (!%p1483_p0)
}
  0x50   : > { %1237 = dma.hbm_to_vmem [thread:$0]  (!%p1778_p7), %s401_s5, 128, %s403_s3, %s391_s13  }
  0x51   : > { %s436_s15 = scalar_lea.hbm %s1973_s2, %s1776_s26  ;;  %s432_s17 = scalar_lea.vmem [#allocation7], %s1773_s14 }
  0x52   : > { %s440_s20 = sshll.u32 %s432_s17, 4  ;;  %s438_s1 = sshll.u32 %s436_s15, 4  ;;  %s441_s20 = int_to_ptr.vmem [resolvable:$true] %s440_s20  ;;  %s439_s1 = int_to_ptr.hbm [resolvable:$true] %s438_s1 }
  0x53   : > { %s1502_s9 = sshra.s32 %s439_s1, 4  ;;  %s1509_s5 = scalar_lea.hbm %s1973_s2, 16  ;;  %s1503_s9 = int_to_ptr.hbm [resolvable:$true] %s1502_s9 }
  0x54   : > { %s1504_s7 = scalar_lea.hbm %s1503_s9, 8  ;;  %p1510_p10 = scmp.lt.s32.totalorder %s1503_s9, %s1973_s2 }
  0x55   : > { %p1505_p2 = scmp.ne.s32.totalorder %s1503_s9, %s1504_s7  ;;  %p1511_p6 = scmp.lt.s32.totalorder %s1509_s5, %s1504_s7 }
  0x57   : > { %p1507_p1 = pnand %p1505_p2, %p1386_p9  ;;  %p1512_p11 = por %p1511_p6, %p1510_p10 }
  0x59   : > { %p1508_p8 = pneg %p1507_p1 }
  0x5b   : > { %p1513_p13 = pnand %p1512_p11, %p1508_p8 }
  0x5d   : > { %1516 = shalt.err (!%p1513_p13)
}
  0x5e   : > { %1243 = dma.hbm_to_vmem [thread:$0]  (!%p1778_p7), %s439_s1, 128, %s441_s20, %s1788_s29  }
  0x5f   : > { %449 = sbr.rel (%p1713_p3) target bundleno = 1185 (0x4a1), region = 64  ;;  %s1858_s14 = sand.u32 (!%p1713_p3), 1, %s1602_s18  }
  0x60   : > { %s1861_s26 = sshll.u32 (!%p1713_p3), %s1858_s14, 3  ;;  %s452_s23 = scalar_lea.sflag (!%p1713_p3), [#allocation3], %s1858_s14 }
  0x61   : > { %s455_s22 = scalar_lea.vmem (!%p1713_p3), [#allocation2], %s1861_s26 }
  0x64   : > { %1577 = dma.done.wait (%p1756_p12), %s452_s23, 128  }
  0x65   : > { %1579 = vsyncadd (%p1756_p12), %s452_s23, 4294967168  ;;  %s461_s25 = sand.u32 1, %s1708_s24   ;;  %s465_s28 = scalar_lea.vmem [#allocation5], %s1861_s26 }
  0x66   : > { %s462_s29 = scalar_lea.sflag [#allocation6], %s461_s25 }
  0x67   : > { %1581 = dma.done.wait (%p1756_p12), %s462_s29, 256  }
  0x68   : > { %1583 = vsyncadd (%p1756_p12), %s462_s29, 4294967040  ;;  %s475_s10 = scalar_lea.vmem [#allocation7], %s1861_s26  ;;  %p2019_p3 = scmp.eq.s32.totalorder %s1708_s24, 0 }
  0x6a   : > { %1585 = dma.done.wait (%p2019_p3), [#allocation9], 512   ;;  %p2020_p7 = pmov %p2019_p3 }
  0x6b   : > { %p2021_p9 = pmov %p2019_p3 }
  0x6c   : > { %1587 = vsyncadd (%p2020_p7), [#allocation9], 4294966784 }
  0x6d   : > { %1589 = dma.done.wait (%p2021_p9), [#allocation12], 512   ;;  %p2022_p0 = pmov %p2019_p3 }
  0x6e   : > { %v1190_v0 = vld [vmem:[#allocation8 + $0x8] sm:$0xff]  ;;  %v1192_v1 = vld [vmem:[#allocation10 + $0x8] sm:$0xff]  ;;  %v1189_v2 = vld [vmem:[#allocation8] sm:$0xff]  ;;  %vm572_vm0 = vcmask 261120   ;;  %vm664_vm1 = vcmask 64512   ;;  %s1618_s20 = smov 112  }
  0x6f   : > { %1591 = vsyncadd (%p2022_p0), [#allocation12], 4294966784  ;;  %v1191_v3 = vld [vmem:[#allocation10] sm:$0xff]  ;;  %582 = vmatpush.bf16.msra.mxu0 %v1190_v0  ;;  %618 = vmatpush.bf16.msra.mxu1 %v1192_v1  ;;  %v548_v5 = vld [vmem:[%s465_s28] sm:$0xff]  ;;  %s1619_s1 = smov 120   ;;  %s1620_s9 = smov 104  }
  0x70   : > { %v546_v4 = vld [vmem:[%s455_s22] sm:$0xff]  ;;  %v549_v7 = vpack.c.bf16 %v548_v5, %v548_v5  ;;  %v1194_v23 = vld [vmem:[#allocation11 + $0x8] sm:$0xff]  ;;  %v1193_v37 = vld [vmem:[#allocation11] sm:$0xff]  ;;  %vm700_vm2 = vcmask 1043456   ;;  %s1621_s16 = smov 8   ;;  %s1622_s5 = smov 24  }
  0x71   : > { %v547_v6 = vpack.c.bf16 %v546_v4, %v546_v4  ;;  %v1302_v8 = vld [vmem:[%s1975_s4] ss:$0 sm:$0xff]  ;;  %654 = vmatpush.bf16.msra.mxu2 %v1194_v23  ;;  %s1623_s3 = smov 16   ;;  %vm910_vm3 = vcmask 130048   ;;  %vm912_vm4 = vcmask 195584   ;;  %s1186_s13 = sshll.u32 %s1708_s24, 3 }
  0x72   : > { %v1303_v9 = vld [vmem:[%s1977_s6] ss:$0 sm:$0xff]  ;;  %s963_s25 = scalar_lea.hbm %s1982_s11, %s1186_s13  ;;  %s544_s27 = scalar_lea.vmem [#allocation14], %s1861_s26 }
  0x73   : > { %583 = vmatpush.bf16.msra.mxu0 %v1189_v2  ;;  %619 = vmatpush.bf16.msra.mxu1 %v1191_v3  ;;  %v550_v38 = vld [vmem:[%s475_s10] sm:$0xff]  ;;  %s2023_s10 = sld [smem:[#allocation30_spill]]  ;;  %s965_s21 = sshll.u32 %s544_s27, 4  ;;  %s966_s21 = int_to_ptr.vmem [resolvable:$true] %s965_s21 }
  0x74   : > { %v551_v39 = vpack.c.bf16 %v550_v38, %v550_v38  ;;  %v1304_v57 = vld [vmem:[%s1979_s8] ss:$0 sm:$0xff]  ;;  %s967_s15 = sshll.u32 %s963_s25, 4  ;;  %s953_s17 = scalar_lea.sflag [#allocation4], %s1858_s14  ;;  %s968_s15 = int_to_ptr.hbm [resolvable:$true] %s967_s15 }
  0x75   : > { %655 = vmatpush.bf16.msra.mxu2 %v1193_v37  ;;  %s1546_s24 = sshra.s32 %s968_s15, 4  ;;  %s1552_s26 = scalar_lea.hbm %s1982_s11, 16  ;;  %s1547_s24 = int_to_ptr.hbm [resolvable:$true] %s1546_s24 }
  0x76   : > { %1149 = vmatmul.msk.bf16.vlgmr.msra.gmra.mxu0 %vm572_vm0, %v547_v6  ;;  %1158 = vmatmul.msk.bf16.vlgmr.msra.gmra.mxu1 %vm572_vm0, %v549_v7  ;;  %p1553_p8 = scmp.lt.s32.totalorder %s1547_s24, %s1982_s11 }
  0x78   : > { %1167 = vmatmul.msk.bf16.vlgmr.msra.gmra.mxu2 %vm572_vm0, %v551_v39 }
  0xf3   : > { %v585_v10 = vpop.f32.mrf.mxu0  ;;  %v621_v11 = vpop.f32.mrf.mxu1 }
  0xf4   : > { %v586_v12 = vadd.f32 %v1302_v8, %v585_v10  ;;  %v622_v13 = vadd.f32 %v1303_v9, %v621_v11 }
  0xf6   : > { %v661_v14 = vpack.c.bf16 %v586_v12, %v586_v12  ;;  %v662_v15 = vpack.c.bf16 %v622_v13, %v622_v13 }
  0xf8   : > { %v718_v16 = vunpack.c.l.b16 %v661_v14  ;;  %v723_v17 = vunpack.c.l.b16 %v662_v15  ;;  %v669_v18 = vsel %vm664_vm1, %v662_v15, 0 }
  0xf9   : > { %678 = vmatpush.bf16.xpose.msra.mxu3 %v669_v18 }
  0xfa   : > { %v719_v19 = vpack.c.b16 %v718_v16, %v718_v16  ;;  %v724_v20 = vpack.c.b16 %v723_v17, %v723_v17 }
  0xfb   : > { %v587_v21 = vpop.f32.mrf.mxu0  ;;  %v623_v22 = vpop.f32.mrf.mxu1 }
  0xfc   : > { %785 = vrot.lane.b32.xlu1 %v724_v20, %s1618_s20  ;;  %725 = vrot.lane.b32.xlu0 %v724_v20, %s1619_s1  ;;  %v657_v58 = vpop.f32.mrf.mxu2 }
  0xfd   : > { %783 = vrot.lane.b32.xlu2 %v719_v19, %s1618_s20  ;;  %v658_v59 = vadd.f32 %v1304_v57, %v657_v58 }
  0xff   : > { %v663_v60 = vpack.c.bf16 %v658_v59, %v658_v59 }
 0x100   : > { %1168 = vmatmul.msk.bf16.vlgmr.msra.gmra.mxu3 %vm664_vm1, %v661_v14 }
 0x101   : > { %v760_v61 = vunpack.c.l.b16 %v663_v60  ;;  %v702_v62 = vsel %vm700_vm2, %v663_v60, 0 }
 0x102   : > { %711 = vmatpush.bf16.msrb.mxu0 %v702_v62 }
 0x103   : > { %v761_v63 = vpack.c.b16 %v760_v61, %v760_v61 }
 0x104   : > { %842 = vrot.lane.b32.xlu1 %v724_v20, %s1620_s9  ;;  %720 = vrot.lane.b32.xlu0 %v719_v19, %s1619_s1  ;;  %v659_v0 = vpop.f32.mrf.mxu2 }
 0x105   : > { %840 = vrot.lane.b32.xlu2 %v719_v19, %s1620_s9 }
 0x157   : > { %v784_v28 = vpop.permute.xlu2 %783 }
 0x15f   : > { %v841_v34 = vpop.permute.xlu2 %840 }
 0x16e   : > { %v786_v24 = vpop.permute.xlu1 %785  ;;  %v726_v25 = vpop.permute.xlu0 %725 }
 0x16f   : > { %v731_v26 = vsel %vm664_vm1, %v726_v25, 0  ;;  %v791_v27 = vsel %vm664_vm1, %v786_v24, 0 }
 0x170   : > { %740 = vmatpush.bf16.xpose.msrb.mxu1 %v731_v26  ;;  %800 = vmatpush.bf16.xpose.msrb.mxu3 %v791_v27 }
 0x176   : > { %v843_v29 = vpop.permute.xlu1 %842  ;;  %v721_v30 = vpop.permute.xlu0 %720 }
 0x177   : > { %v848_v31 = vsel %vm664_vm1, %v843_v29, 0  ;;  %1170 = vmatmul.msk.bf16.vlgmr.msrb.gmra.mxu1 %vm664_vm1, %v721_v30  ;;  %1172 = vmatmul.msk.bf16.vlgmr.msrb.gmra.mxu3 %vm664_vm1, %v784_v28 }
 0x178   : > { %857 = vmatpush.bf16.xpose.msra.mxu1 %v848_v31 }
 0x183   : > { %v680_v32 = vpop.f32.mrf.mxu3 }
 0x184   : > { %v684_v33 = vmul.f32 0.35355338, %v680_v32 }
 0x186   : > { %v685_v35 = vsel %vm664_vm1, %v684_v33, -inf }
 0x187   : > { %1174 = vmatmul.msk.bf16.vlgmr.msra.gmra.mxu1 %vm664_vm1, %v841_v34  ;;  %686 = vmax.xlane.f32.xlu1 %v685_v35 }
 0x18b   : > { %v682_v36 = vpop.f32.mrf.mxu3 }
 0x1f4   : > { %v742_v40 = vpop.f32.mrf.mxu1 }
 0x1f5   : > { %v746_v41 = vmul.f32 0.35355338, %v742_v40 }
 0x1f7   : > { %v747_v42 = vsel %vm664_vm1, %v746_v41, -inf }
 0x1f8   : > { %748 = vmax.xlane.f32.xlu0 %v747_v42 }
 0x1fa   : > { %v687_v43 = vpop.xlane.xlu1 %686  ;;  %v802_v44 = vpop.f32.mrf.mxu3 }
 0x1fb   : > { %v688_v45 = vsub.f32 %v684_v33, %v687_v43  ;;  %v806_v54 = vmul.f32 0.35355338, %v802_v44 }
 0x1fc   : > { %v744_v46 = vpop.f32.mrf.mxu1 }
 0x1fd   : > { %v689_v47 = vmul.f32 1.442695, %v688_v45  ;;  %v807_v56 = vsel %vm664_vm1, %v806_v54, -inf  ;;  %v1196_v46 = vld [vmem:[#allocation13 + $0x8] sm:$0xff] }
 0x1fe   : > { %944 = vmatpush.bf16.msra.mxu3 %v1196_v46 }
 0x1ff   : > { %1306 = vpow2.f32 %v689_v47  ;;  %v1195_v47 = vld [vmem:[#allocation13] sm:$0xff] }
 0x202   : > { %v804_v48 = vpop.f32.mrf.mxu3  ;;  %945 = vmatpush.bf16.msra.mxu3 %v1195_v47 }
 0x204   : > { %v859_v49 = vpop.f32.mrf.mxu1 }
 0x205   : > { %v1307_v50 = vpop.eup %1306  ;;  %v863_v51 = vmul.f32 0.35355338, %v859_v49 }
 0x206   : > { %v691_v52 = vsel %vm664_vm1, %v1307_v50, 0.0 }
 0x207   : > { %692 = vadd.xlane.f32.xlu1 %v691_v52  ;;  %v864_v53 = vsel %vm664_vm1, %v863_v51, -inf }
 0x208   : > { %865 = vmax.xlane.f32.xlu2 %v864_v53 }
 0x20c   : > { %v861_v55 = vpop.f32.mrf.mxu1 }
 0x20d   : > { %v1305_v55 = vld [vmem:[%s2023_s10] ss:$0 sm:$0xff] }
 0x210   : > { %808 = vmax.xlane.f32.xlu2 %v807_v56 }
 0x228   : > { %762 = vrot.lane.b32.xlu2 %v761_v63, %s1619_s1 }
 0x26b   : > { %v749_v1 = vpop.xlane.xlu0 %748 }
 0x26c   : > { %v750_v2 = vsub.f32 %v746_v41, %v749_v1 }
 0x26e   : > { %v751_v3 = vmul.f32 1.442695, %v750_v2 }
 0x270   : > { %1308 = vpow2.f32 %v751_v3 }
 0x276   : > { %v1309_v4 = vpop.eup %1308 }
 0x277   : > { %v753_v5 = vsel %vm664_vm1, %v1309_v4, 0.0 }
 0x278   : > { %754 = vadd.xlane.f32.xlu0 %v753_v5 }
 0x27a   : > { %v693_v6 = vpop.xlane.xlu1 %692 }
 0x27b   : > { %1310 = vrcp.f32 %v693_v6  ;;  %v866_v7 = vpop.xlane.xlu2 %865 }
 0x27c   : > { %v867_v8 = vsub.f32 %v863_v51, %v866_v7 }
 0x27e   : > { %v868_v9 = vmul.f32 1.442695, %v867_v8 }
 0x280   : > { %1312 = vpow2.f32 %v868_v9 }
 0x281   : > { %v1311_v10 = vpop.eup %1310 }
 0x282   : > { %v695_v11 = vmul.f32 %v1311_v10, %v1307_v50 }
 0x283   : > { %v809_v12 = vpop.xlane.xlu2 %808 }
 0x284   : > { %v810_v13 = vsub.f32 %v806_v54, %v809_v12  ;;  %v696_v14 = vpack.c.bf16 %v695_v11, %v695_v11 }
 0x286   : > { %v1313_v15 = vpop.eup %1312  ;;  %v811_v16 = vmul.f32 1.442695, %v810_v13  ;;  %1169 = vmatmul.msk.bf16.vlgmr.msrb.gmra.mxu0 %vm664_vm1, %v696_v14 }
 0x287   : > { %v870_v17 = vsel %vm664_vm1, %v1313_v15, 0.0 }
 0x288   : > { %1314 = vpow2.f32 %v811_v16  ;;  %871 = vadd.xlane.f32.xlu0 %v870_v17 }
 0x28b   : > { %v763_v20 = vpop.permute.xlu2 %762 }
 0x28c   : > { %v768_v21 = vsel %vm700_vm2, %v763_v20, 0 }
 0x28d   : > { %777 = vmatpush.bf16.msrb.mxu2 %v768_v21 }
 0x28e   : > { %v1315_v18 = vpop.eup %1314 }
 0x28f   : > { %v813_v19 = vsel %vm664_vm1, %v1315_v18, 0.0 }
 0x290   : > { %814 = vadd.xlane.f32.xlu1 %v813_v19 }
 0x29c   : > { %876 = vrot.lane.b32.xlu0 %v761_v63, %s1620_s9 }
 0x2a9   : > { %819 = vrot.lane.b32.xlu1 %v761_v63, %s1618_s20  ;;  %s1548_s20 = scalar_lea.hbm %s1547_s24, 8 }
 0x2aa   : > { %p1549_p12 = scmp.ne.s32.totalorder %s1547_s24, %s1548_s20  ;;  %p1554_p10 = scmp.lt.s32.totalorder %s1552_s26, %s1548_s20 }
 0x2ac   : > { %p1550_p2 = pnand %p1549_p12, %p1763_p4  ;;  %p1555_p6 = por %p1554_p10, %p1553_p8 }
 0x2ae   : > { %p1551_p1 = pneg %p1550_p2 }
 0x2b0   : > { %p1556_p11 = pnand %p1555_p6, %p1551_p1 }
 0x2eb   : > { %v755_v22 = vpop.xlane.xlu0 %754 }
 0x2ec   : > { %1316 = vrcp.f32 %v755_v22 }
 0x2f2   : > { %v1317_v23 = vpop.eup %1316 }
 0x2f3   : > { %v757_v24 = vmul.f32 %v1317_v23, %v1309_v4 }
 0x2f5   : > { %v758_v25 = vpack.c.bf16 %v757_v24, %v757_v24 }
 0x2f7   : > { %1171 = vmatmul.msk.bf16.vlgmr.msrb.gmra.mxu2 %vm664_vm1, %v758_v25 }
 0x2fb   : > { %v872_v26 = vpop.xlane.xlu0 %871 }
 0x2fc   : > { %1318 = vrcp.f32 %v872_v26 }
 0x302   : > { %v1319_v28 = vpop.eup %1318 }
 0x303   : > { %v713_v27 = vpop.f32.mrf.mxu0  ;;  %v874_v30 = vmul.f32 %v1319_v28, %v1313_v15  ;;  %v815_v31 = vpop.xlane.xlu1 %814 }
 0x304   : > { %1320 = vrcp.f32 %v815_v31 }
 0x305   : > { %v875_v34 = vpack.c.bf16 %v874_v30, %v874_v30 }
 0x30a   : > { %v1321_v35 = vpop.eup %1320 }
 0x30b   : > { %v715_v29 = vpop.f32.mrf.mxu0  ;;  %v817_v36 = vmul.f32 %v1321_v35, %v1315_v18 }
 0x30d   : > { %v818_v39 = vpack.c.bf16 %v817_v36, %v817_v36 }
 0x30e   : > { %v877_v32 = vpop.permute.xlu0 %876 }
 0x30f   : > { %v882_v33 = vsel %vm700_vm2, %v877_v32, 0 }
 0x310   : > { %891 = vmatpush.bf16.msra.mxu2 %v882_v33 }
 0x313   : > { %1175 = vmatmul.msk.bf16.vlgmr.msra.gmra.mxu2 %vm664_vm1, %v875_v34 }
 0x31b   : > { %v820_v37 = vpop.permute.xlu1 %819 }
 0x31c   : > { %v825_v38 = vsel %vm700_vm2, %v820_v37, 0 }
 0x31d   : > { %834 = vmatpush.bf16.msra.mxu0 %v825_v38 }
 0x320   : > { %1173 = vmatmul.msk.bf16.vlgmr.msra.gmra.mxu0 %vm664_vm1, %v818_v39 }
 0x37a   : > { %v779_v40 = vpop.f32.mrf.mxu2 }
 0x37b   : > { %898 = vrot.lane.b32.xlu2 %v779_v40, %s1621_s16 }
 0x382   : > { %v781_v41 = vpop.f32.mrf.mxu2 }
 0x396   : > { %v893_v42 = vpop.f32.mrf.mxu2 }
 0x397   : > { %906 = vrot.lane.b32.xlu2 %v893_v42, %s1622_s5 }
 0x39d   : > { %v836_v43 = vpop.f32.mrf.mxu0 }
 0x39e   : > { %902 = vrot.lane.b32.xlu0 %v836_v43, %s1623_s3  ;;  %v895_v44 = vpop.f32.mrf.mxu2 }
 0x3a5   : > { %v838_v45 = vpop.f32.mrf.mxu0 }
 0x3d5   : > { %v899_v48 = vpop.permute.xlu2 %898 }
 0x3d6   : > { %v909_v49 = vsel %vm664_vm1, %v713_v27, %v899_v48 }
 0x3f1   : > { %v907_v51 = vpop.permute.xlu2 %906 }
 0x410   : > { %v903_v50 = vpop.permute.xlu0 %902 }
 0x411   : > { %v911_v52 = vsel %vm910_vm3, %v909_v49, %v903_v50 }
 0x412   : > { %v913_v53 = vsel %vm912_vm4, %v911_v52, %v907_v51 }
 0x413   : > { %v914_v54 = vpack.c.bf16 %v913_v53, %v913_v53 }
 0x415   : > { %1184 = vmatmul.msk.bf16.vlgmr.msra.gmra.mxu3 %vm572_vm0, %v914_v54 }
 0x498   : > { %v947_v56 = vpop.f32.mrf.mxu3 }
 0x499   : > { %v948_v57 = vadd.f32 %v1305_v55, %v947_v56 }
 0x49b   : > { %951 = vst.msk [vmem:[%s544_s27] sm:$0xff] %vm572_vm0, %v948_v57 }
 0x49c   : > { %1559 = shalt.err (!%p1556_p11)
}
 0x49d   : > { %1219 = dma.vmem_to_hbm [thread:$0]  (%p1763_p4), %s966_s21, 128, %s968_s15, %s953_s17  }
 0x4a0   : > { %v949_v58 = vpop.f32.mrf.mxu3 }
 0x4a1 PF: > { %s2024_s14 = sld [smem:[#allocation20_spill]] }
 0x4a2   : > { %s2026_s5 = sld [smem:[#allocation21_spill]] }
 0x4a7   : > { %s979_s3 = sand.u32 1, %s2024_s14  }
 0x4a8   : > { %p2027_p13 = scmp.ge.s32.totalorder %s2026_s5, 2  ;;  %s980_s13 = scalar_lea.sflag [#allocation4], %s979_s3 }
 0x4aa   : > { %p1245_p3 = pnand %p2027_p13, %p1767_p5 }
 0x4ac   : > { %p1246_p7 = pneg %p1245_p3 }
 0x4ae   : > { %1593 = dma.done.wait (%p1246_p7), %s980_s13, 128  }
 0x4af   : > { %1595 = vsyncadd (%p1246_p7), %s980_s13, 4294967168  ;;  %s2028_s20 = sld [smem:[#allocation22_spill]]  ;;  %s2030_s17 = smov %s1602_s18 }
 0x4b0   : > { %s2029_s23 = sld [smem:[#allocation23_spill]]  ;;  %s2031_s18 = smov %s1606_s19 }
 0x4b5   : > { %p29_p9 = scmp.ge.s32.totalorder %s2028_s20, 4  }
 0x4b6   : > { %s2032_s19 = smov %s2029_s23 }
 0x4b7   :  { %31 = sbr.rel (!%p29_p9) target bundleno = 16 (0x10), region = 149 }
 0x4bc   :  { %986 = vsyncpa [#allocation3], 1 }
 0x4bd   :  { %988 = vsyncpa [#allocation3 + $0x1], 1 }
 0x4be   :  { %989 = vsyncpa [#allocation6], 1 }
 0x4bf   :  { %991 = vsyncpa [#allocation6 + $0x1], 1 }
 0x4c0   :  { %992 = vsyncpa [#allocation9], 1 }
 0x4c1   :  { %993 = vsyncpa [#allocation12], 1 }
 0x4c2   :  { %994 = vsyncpa [#allocation4], 1 }
 0x4c3   :  { %996 = vsyncpa [#allocation4 + $0x1], 1 }

</bundles_post_ra>
